<compile_context>
chip_gen: v6e
topology: v6e:2x2x1
jax: 0.10.0
libtpu: 0.0.40
codegen_flags: <defaults>
</compile_context>

<pallas_src>
import functools

import jax
import jax.numpy as jnp
from jax.experimental import pallas as pl
from jax.experimental.pallas import tpu as pltpu


C_IN = 3
C_STUDENT = 192
C_TEACHER = 128
C_CONCAT = C_STUDENT + C_TEACHER   # 320, matches nn.Conv2d(320, 128, 1)
DS = 4                             # both backbone stubs downsample by 4
K_PATCH = C_IN * DS * DS           # 48

_FLOPS_PER_ROW = 2 * (K_PATCH * C_CONCAT + C_CONCAT * 128 + 128 * 256 + 256 * 16)
_WEIGHT_BYTES = 2 * (K_PATCH * C_CONCAT + C_CONCAT * 128 + 128 * 256 + 256 * 16)


def _chip_kind():
    try:
        return jax.devices()[0].device_kind.lower()
    except Exception:  # pragma: no cover - no TPU visible at import
        return ""


_KIND = _chip_kind()
_IS_V6_OR_NEWER = ("v6" in _KIND) or ("v7" in _KIND)
_TWO_CORES = "v7" in _KIND                      # v7x: 2 TensorCores / chip
_MAX_TILE = 4096 if _IS_V6_OR_NEWER else 2048   # v5e/unknown: stay well under
                                                # the 16 MiB default scoped VMEM
_ACC_DTYPE = jnp.bfloat16 if _IS_V6_OR_NEWER else jnp.float32


# ----------------------------------------------------------------------------
# Fused kernel: per-row chain of 4 matmuls + bias + ReLU (last stage no ReLU)
# ----------------------------------------------------------------------------
def _fused_forward_kernel(x_ref, wcat_ref, bcat_ref, w1_ref, b1_ref,
                          w2_ref, b2_ref, w3_ref, b3_ref, o_ref, *, acc_dtype):
    x = x_ref[...]                                                   # (tm, 48) bf16
    # stage 1: fused student||teacher stride-4 conv -> 320 ch, ReLU
    h = jnp.dot(x, wcat_ref[...], preferred_element_type=acc_dtype)
    h = jnp.maximum(h + bcat_ref[...], 0).astype(jnp.bfloat16)
    # stage 2: 1x1 conv 320 -> 128, ReLU
    h = jnp.dot(h, w1_ref[...], preferred_element_type=acc_dtype)
    h = jnp.maximum(h + b1_ref[...], 0).astype(jnp.bfloat16)
    # stage 3: ConvT(128->64, k=2, s=2) as 128 -> 256 (2x2 sub-pixels x 64 ch), ReLU
    h = jnp.dot(h, w2_ref[...], preferred_element_type=acc_dtype)
    h = jnp.maximum(h + b2_ref[...], 0).astype(jnp.bfloat16)
    # stage 4: ConvT(64->1, k=2, s=2) as block-diagonal 256 -> 16, no ReLU
    h = jnp.dot(h, w3_ref[...], preferred_element_type=jnp.float32)
    o_ref[...] = (h + b3_ref[...]).astype(o_ref.dtype)
    # TODO(synk): the (tm, 16) output block is lane-sparse (16 < 128 lanes); a
    # lane-dense (tm//8, 128) writeback via kron(eye(8), w3) is only worth it
    # if profiling shows the masked stores binding.


def _round_up(x, m):
    return ((x + m - 1) // m) * m


def _cdiv(a, b):
    return -(-a // b)


def _tile_and_pad(m, max_tile, two_cores):
    """Pick a large row tile; split for megacore only on 2-TC chips (v7x)."""
    m8 = _round_up(max(m, 8), 8)
    tm = min(max_tile, m8)
    if two_cores and m8 >= 4 * 512:
        # aim for an even number of steps >= 4 so each core gets >=2 pipelined
        # steps, without shrinking tiles below ~512 rows of work.
        steps = _cdiv(m8, tm)
        target = max(4, steps)
        if target % 2:
            target += 1
        tm = min(tm, _round_up(_cdiv(m8, target), 8))
    m_pad = _round_up(m8, tm)
    return tm, m_pad


# ----------------------------------------------------------------------------
# Parameters (backbone stubs + student_upsample weights)
# ----------------------------------------------------------------------------
def init_params(key):
    ks = jax.random.split(key, 10)
    s = 0.05
    p = {}
    # TODO(synk): teacher EfficientNetCrowdCountingModel.downsample and the
    # pretrained EfficientNet-B0 student backbone are replaced by single
    # strided-conv + ReLU downsample stubs (pretrained weights unavailable).
    p["teacher_w"] = s * jax.random.normal(ks[0], (C_TEACHER, C_IN, DS, DS), jnp.float32)
    p["teacher_b"] = s * jax.random.normal(ks[1], (C_TEACHER,), jnp.float32)
    p["student_w"] = s * jax.random.normal(ks[2], (C_STUDENT, C_IN, DS, DS), jnp.float32)
    p["student_b"] = s * jax.random.normal(ks[3], (C_STUDENT,), jnp.float32)
    # student_upsample: Conv2d(320,128,1) -> ReLU -> ConvT(128,64,2,2) -> ReLU
    #                   -> ConvT(64,1,2,2)
    p["up1_w"] = s * jax.random.normal(ks[4], (128, C_CONCAT, 1, 1), jnp.float32)
    p["up1_b"] = s * jax.random.normal(ks[5], (128,), jnp.float32)
    p["up2_w"] = s * jax.random.normal(ks[6], (128, 64, 2, 2), jnp.float32)  # (Cin, Cout, 2, 2)
    p["up2_b"] = s * jax.random.normal(ks[7], (64,), jnp.float32)
    p["up3_w"] = s * jax.random.normal(ks[8], (64, 1, 2, 2), jnp.float32)    # (Cin, Cout, 2, 2)
    p["up3_b"] = s * jax.random.normal(ks[9], (1,), jnp.float32)
    return p


# ----------------------------------------------------------------------------
# Forward pass (NCHW in, NCHW out)
# ----------------------------------------------------------------------------
@jax.jit
def student_crowd_counting_forward(params, x_nchw):
    n, c, h, w = x_nchw.shape
    assert c == C_IN, c
    assert h % DS == 0 and w % DS == 0, "H and W must be multiples of 4"
    ho, wo = h // DS, w // DS
    m = n * ho * wo

    # im2col for the stride-4/kernel-4 downsample, directly from NCHW.
    # Cast to bf16 BEFORE the transpose so the materialized layout pass moves
    # half the bytes. Rows = output pixels, columns ordered (cin, kh, kw).
    patches = x_nchw.astype(jnp.bfloat16).reshape(n, C_IN, ho, DS, wo, DS)
    patches = patches.transpose(0, 2, 4, 1, 3, 5).reshape(m, K_PATCH)

    # ---- weight preprocessing (tiny, constant-folded under jit) -------------
    # student||teacher downsample fused along the output dim -> channel concat
    # (torch.cat((student, teacher), dim=1)) comes straight out of the matmul.
    w_s = params["student_w"].reshape(C_STUDENT, K_PATCH).T        # (48, 192)
    w_t = params["teacher_w"].reshape(C_TEACHER, K_PATCH).T        # (48, 128)
    w_cat = jnp.concatenate([w_s, w_t], axis=1)                    # (48, 320)
    b_cat = jnp.concatenate([params["student_b"], params["teacher_b"]])

    w1 = params["up1_w"].reshape(128, C_CONCAT).T                  # (320, 128)
    b1 = params["up1_b"]

    # ConvT(128->64, k2, s2): columns ordered (a, b, co) so each 2x2 sub-pixel
    # owns a contiguous 64-channel block.
    w2 = params["up2_w"].transpose(0, 2, 3, 1).reshape(128, 64 * 4)  # (128, 256)
    b2 = jnp.tile(params["up2_b"], 4)                                # (256,)

    # ConvT(64->1, k2, s2): block-diagonal over the 4 (a, b) sub-pixels.
    # Output column index = 8a + 4b + 2a' + b'.
    w3_small = params["up3_w"].reshape(64, 4)                        # cols (a', b')
    w3 = jnp.kron(jnp.eye(4, dtype=w3_small.dtype), w3_small)        # (256, 16)
    b3 = jnp.tile(params["up3_b"], 16)                               # (16,)

    tm, m_pad = _tile_and_pad(m, _MAX_TILE, _TWO_CORES)
    if m_pad != m:
        patches = jnp.pad(patches, ((0, m_pad - m), (0, 0)))
    grid = (m_pad // tm,)

    bias_dtype = _ACC_DTYPE
    cost = pl.CostEstimate(
        flops=int(_FLOPS_PER_ROW) * int(m_pad),
        transcendentals=0,
        bytes_accessed=int(m_pad) * (K_PATCH * 2 + 16 * 4) + _WEIGHT_BYTES,
    )

    out = pl.pallas_call(
        functools.partial(_fused_forward_kernel, acc_dtype=_ACC_DTYPE),
        out_shape=jax.ShapeDtypeStruct((m_pad, 16), jnp.float32),
        grid_spec=pltpu.PrefetchScalarGridSpec(
            num_scalar_prefetch=0,
            grid=grid,
            in_specs=[
                pl.BlockSpec((tm, K_PATCH), lambda i: (i, 0)),        # patches
                pl.BlockSpec((K_PATCH, C_CONCAT), lambda i: (0, 0)),  # w_cat
                pl.BlockSpec((1, C_CONCAT), lambda i: (0, 0)),        # b_cat
                pl.BlockSpec((C_CONCAT, 128), lambda i: (0, 0)),      # w1
                pl.BlockSpec((1, 128), lambda i: (0, 0)),             # b1
                pl.BlockSpec((128, 256), lambda i: (0, 0)),           # w2
                pl.BlockSpec((1, 256), lambda i: (0, 0)),             # b2
                pl.BlockSpec((256, 16), lambda i: (0, 0)),            # w3
                pl.BlockSpec((1, 16), lambda i: (0, 0)),              # b3
            ],
            out_specs=pl.BlockSpec((tm, 16), lambda i: (i, 0)),
        ),
        compiler_params=pltpu.CompilerParams(
            dimension_semantics=("parallel",)),
        cost_estimate=cost,
    )(patches,
      w_cat.astype(jnp.bfloat16), b_cat.reshape(1, -1).astype(bias_dtype),
      w1.astype(jnp.bfloat16), b1.reshape(1, -1).astype(bias_dtype),
      w2.astype(jnp.bfloat16), b2.reshape(1, -1).astype(bias_dtype),
      w3.astype(jnp.bfloat16), b3.reshape(1, -1).astype(jnp.float32))

    # Pixel-shuffle the 16 sub-pixel columns (a, b, a', b') back to (H, W):
    # one slice + reshape + single transpose, kept adjacent so XLA fuses them.
    out = out[:m].reshape(n, ho, wo, 2, 2, 2, 2)
    out = out.transpose(0, 1, 3, 5, 2, 4, 6).reshape(n, h, w)
    return out[:, None, :, :]                                        # NCHW (N, 1, H, W)


if __name__ == "__main__":
    key = jax.random.PRNGKey(0)
    k_param, k_input = jax.random.split(key)

    params = init_params(k_param)
    x = jax.random.normal(k_input, (2, C_IN, 16, 16), jnp.float32)   # NCHW

    out = student_crowd_counting_forward(params, x)
    jax.block_until_ready(out)

    assert out.shape == (2, 1, 16, 16), out.shape
    assert out.dtype == jnp.float32
    assert bool(jnp.all(jnp.isfinite(out)))
    print("KERNEL_OK")
</pallas_src>

<mosaic_0001>
module attributes {stable_mosaic.version = 11 : i64} {
  func.func @_fused_forward_kernel(%arg0: i32, %arg1: memref<32x48xbf16, #tpu.memory_space<vmem>>, %arg2: memref<48x320xbf16, #tpu.memory_space<vmem>>, %arg3: memref<1x320xf32, #tpu.memory_space<vmem>>, %arg4: memref<320x128xbf16, #tpu.memory_space<vmem>>, %arg5: memref<1x128xf32, #tpu.memory_space<vmem>>, %arg6: memref<128x256xbf16, #tpu.memory_space<vmem>>, %arg7: memref<1x256xf32, #tpu.memory_space<vmem>>, %arg8: memref<256x16xbf16, #tpu.memory_space<vmem>>, %arg9: memref<1x16xf32, #tpu.memory_space<vmem>>, %arg10: memref<32x16xf32, #tpu.memory_space<vmem>>) attributes {dimension_semantics = [#tpu.dimension_semantics<parallel>], iteration_bounds = array<i64: 1>, scalar_prefetch = 0 : i64, scratch_operands = 0 : i64, tpu.core_type = #tpu.core_type<tc>, window_params = [{transform_indices = @transform_0, window_bounds = array<i64: 32, 48>}, {pipeline_mode = #tpu.pipeline_mode<synchronous>, transform_indices = @transform_1, window_bounds = array<i64: 48, 320>}, {pipeline_mode = #tpu.pipeline_mode<synchronous>, transform_indices = @transform_2, window_bounds = array<i64: 1, 320>}, {pipeline_mode = #tpu.pipeline_mode<synchronous>, transform_indices = @transform_3, window_bounds = array<i64: 320, 128>}, {pipeline_mode = #tpu.pipeline_mode<synchronous>, transform_indices = @transform_4, window_bounds = array<i64: 1, 128>}, {pipeline_mode = #tpu.pipeline_mode<synchronous>, transform_indices = @transform_5, window_bounds = array<i64: 128, 256>}, {pipeline_mode = #tpu.pipeline_mode<synchronous>, transform_indices = @transform_6, window_bounds = array<i64: 1, 256>}, {pipeline_mode = #tpu.pipeline_mode<synchronous>, transform_indices = @transform_7, window_bounds = array<i64: 256, 16>}, {pipeline_mode = #tpu.pipeline_mode<synchronous>, transform_indices = @transform_8, window_bounds = array<i64: 1, 16>}, {transform_indices = @transform_9, window_bounds = array<i64: 32, 16>}]} {
    %c0 = arith.constant 0 : index
    %c0_0 = arith.constant 0 : index
    %0 = vector.load %arg1[%c0, %c0_0] : memref<32x48xbf16, #tpu.memory_space<vmem>>, vector<32x48xbf16>
    %c0_1 = arith.constant 0 : index
    %c0_2 = arith.constant 0 : index
    %1 = vector.load %arg2[%c0_1, %c0_2] : memref<48x320xbf16, #tpu.memory_space<vmem>>, vector<48x320xbf16>
    %cst = arith.constant dense<0.000000e+00> : vector<32x320xf32>
    %2 = tpu.matmul %0, %1, %cst {dimension_numbers = #tpu.dot_dimension_numbers<[1], [0], [0], [1], [0, 0, 1, 1], [], []>} : vector<32x48xbf16>, vector<48x320xbf16>, vector<32x320xf32> -> vector<32x320xf32>
    %c0_3 = arith.constant 0 : index
    %c0_4 = arith.constant 0 : index
    %3 = vector.load %arg3[%c0_3, %c0_4] : memref<1x320xf32, #tpu.memory_space<vmem>>, vector<1x320xf32>
    %4 = vector.broadcast %3 : vector<1x320xf32> to vector<32x320xf32>
    %5 = arith.addf %2, %4 : vector<32x320xf32>
    %cst_5 = arith.constant 0.000000e+00 : f32
    %6 = vector.broadcast %cst_5 : f32 to vector<32x320xf32>
    %7 = arith.maximumf %5, %6 : vector<32x320xf32>
    %8 = arith.truncf %7 : vector<32x320xf32> to vector<32x320xbf16>
    %c0_6 = arith.constant 0 : index
    %c0_7 = arith.constant 0 : index
    %9 = vector.load %arg4[%c0_6, %c0_7] : memref<320x128xbf16, #tpu.memory_space<vmem>>, vector<320x128xbf16>
    %cst_8 = arith.constant dense<0.000000e+00> : vector<32x128xf32>
    %10 = tpu.matmul %8, %9, %cst_8 {dimension_numbers = #tpu.dot_dimension_numbers<[1], [0], [0], [1], [0, 0, 1, 1], [], []>} : vector<32x320xbf16>, vector<320x128xbf16>, vector<32x128xf32> -> vector<32x128xf32>
    %c0_9 = arith.constant 0 : index
    %c0_10 = arith.constant 0 : index
    %11 = vector.load %arg5[%c0_9, %c0_10] : memref<1x128xf32, #tpu.memory_space<vmem>>, vector<1x128xf32>
    %12 = vector.broadcast %11 : vector<1x128xf32> to vector<32x128xf32>
    %13 = arith.addf %10, %12 : vector<32x128xf32>
    %cst_11 = arith.constant 0.000000e+00 : f32
    %14 = vector.broadcast %cst_11 : f32 to vector<32x128xf32>
    %15 = arith.maximumf %13, %14 : vector<32x128xf32>
    %16 = arith.truncf %15 : vector<32x128xf32> to vector<32x128xbf16>
    %c0_12 = arith.constant 0 : index
    %c0_13 = arith.constant 0 : index
    %17 = vector.load %arg6[%c0_12, %c0_13] : memref<128x256xbf16, #tpu.memory_space<vmem>>, vector<128x256xbf16>
    %cst_14 = arith.constant dense<0.000000e+00> : vector<32x256xf32>
    %18 = tpu.matmul %16, %17, %cst_14 {dimension_numbers = #tpu.dot_dimension_numbers<[1], [0], [0], [1], [0, 0, 1, 1], [], []>} : vector<32x128xbf16>, vector<128x256xbf16>, vector<32x256xf32> -> vector<32x256xf32>
    %c0_15 = arith.constant 0 : index
    %c0_16 = arith.constant 0 : index
    %19 = vector.load %arg7[%c0_15, %c0_16] : memref<1x256xf32, #tpu.memory_space<vmem>>, vector<1x256xf32>
    %20 = vector.broadcast %19 : vector<1x256xf32> to vector<32x256xf32>
    %21 = arith.addf %18, %20 : vector<32x256xf32>
    %cst_17 = arith.constant 0.000000e+00 : f32
    %22 = vector.broadcast %cst_17 : f32 to vector<32x256xf32>
    %23 = arith.maximumf %21, %22 : vector<32x256xf32>
    %24 = arith.truncf %23 : vector<32x256xf32> to vector<32x256xbf16>
    %c0_18 = arith.constant 0 : index
    %c0_19 = arith.constant 0 : index
    %25 = vector.load %arg8[%c0_18, %c0_19] : memref<256x16xbf16, #tpu.memory_space<vmem>>, vector<256x16xbf16>
    %cst_20 = arith.constant dense<0.000000e+00> : vector<32x16xf32>
    %26 = tpu.matmul %24, %25, %cst_20 {dimension_numbers = #tpu.dot_dimension_numbers<[1], [0], [0], [1], [0, 0, 1, 1], [], []>} : vector<32x256xbf16>, vector<256x16xbf16>, vector<32x16xf32> -> vector<32x16xf32>
    %c0_21 = arith.constant 0 : index
    %c0_22 = arith.constant 0 : index
    %27 = vector.load %arg9[%c0_21, %c0_22] : memref<1x16xf32, #tpu.memory_space<vmem>>, vector<1x16xf32>
    %28 = vector.broadcast %27 : vector<1x16xf32> to vector<32x16xf32>
    %29 = arith.addf %26, %28 : vector<32x16xf32>
    %c0_23 = arith.constant 0 : index
    %c0_24 = arith.constant 0 : index
    %30 = vector.load %arg10[%c0_23, %c0_24] : memref<32x16xf32, #tpu.memory_space<vmem>>, vector<32x16xf32>
    tpu.vector_store %arg10[%c0_23, %c0_24], %29 {strides = array<i32>} : memref<32x16xf32, #tpu.memory_space<vmem>>, vector<32x16xf32>,
    return
  }
  func.func @transform_0(%arg0: i32) -> (i32, i32) {
    %c0_i32 = arith.constant 0 : i32
    %c0_i32_0 = arith.constant 0 : i32
    return %arg0, %c0_i32 : i32, i32
  }
  func.func @transform_1(%arg0: i32) -> (i32, i32) {
    %c0_i32 = arith.constant 0 : i32
    %c0_i32_0 = arith.constant 0 : i32
    %c0_i32_1 = arith.constant 0 : i32
    return %c0_i32, %c0_i32_0 : i32, i32
  }
  func.func @transform_2(%arg0: i32) -> (i32, i32) {
    %c0_i32 = arith.constant 0 : i32
    %c0_i32_0 = arith.constant 0 : i32
    %c0_i32_1 = arith.constant 0 : i32
    return %c0_i32, %c0_i32_0 : i32, i32
  }
  func.func @transform_3(%arg0: i32) -> (i32, i32) {
    %c0_i32 = arith.constant 0 : i32
    %c0_i32_0 = arith.constant 0 : i32
    %c0_i32_1 = arith.constant 0 : i32
    return %c0_i32, %c0_i32_0 : i32, i32
  }
  func.func @transform_4(%arg0: i32) -> (i32, i32) {
    %c0_i32 = arith.constant 0 : i32
    %c0_i32_0 = arith.constant 0 : i32
    %c0_i32_1 = arith.constant 0 : i32
    return %c0_i32, %c0_i32_0 : i32, i32
  }
  func.func @transform_5(%arg0: i32) -> (i32, i32) {
    %c0_i32 = arith.constant 0 : i32
    %c0_i32_0 = arith.constant 0 : i32
    %c0_i32_1 = arith.constant 0 : i32
    return %c0_i32, %c0_i32_0 : i32, i32
  }
  func.func @transform_6(%arg0: i32) -> (i32, i32) {
    %c0_i32 = arith.constant 0 : i32
    %c0_i32_0 = arith.constant 0 : i32
    %c0_i32_1 = arith.constant 0 : i32
    return %c0_i32, %c0_i32_0 : i32, i32
  }
  func.func @transform_7(%arg0: i32) -> (i32, i32) {
    %c0_i32 = arith.constant 0 : i32
    %c0_i32_0 = arith.constant 0 : i32
    %c0_i32_1 = arith.constant 0 : i32
    return %c0_i32, %c0_i32_0 : i32, i32
  }
  func.func @transform_8(%arg0: i32) -> (i32, i32) {
    %c0_i32 = arith.constant 0 : i32
    %c0_i32_0 = arith.constant 0 : i32
    %c0_i32_1 = arith.constant 0 : i32
    return %c0_i32, %c0_i32_0 : i32, i32
  }
  func.func @transform_9(%arg0: i32) -> (i32, i32) {
    %c0_i32 = arith.constant 0 : i32
    %c0_i32_0 = arith.constant 0 : i32
    return %arg0, %c0_i32 : i32, i32
  }
}

</mosaic_0001>

<bundles_post_ra>
// kernel: tile.13
= control target key start
LH: loop header
LB: loop body
LE: loop exit
PB: predicated region body
PF: predicated region fallthrough
CT: control target
= control target key end

     0   :  { %s22_s0 = inlined_call_operand.vmem [shape: f32[64], index: 0, kind: input, shape index: {}]   ;;  %s23_s1 = inlined_call_operand.vmem [shape: f32[4,64], index: 1, kind: output, shape index: {}]  }
   0x1   :  { %v4_v0 = vld [vmem:[%s22_s0] ss:$0 sm:$0xff] }
   0x2   :  { %5 = vst [vmem:[%s23_s1] sm:$0xf] %v4_v0 }

// kernel: tile.18
= control target key start
LH: loop header
LB: loop body
LE: loop exit
PB: predicated region body
PF: predicated region fallthrough
CT: control target
= control target key end

     0   :  { %s7_s8 = smov 3  ;;  %vm9_vm0 = vcmask 523264   ;;  %s34_s9 = smov 64   ;;  %vm16_vm1 = vcmask 1048064   ;;  %s54_s0 = inlined_call_operand.vmem [shape: f32[4,64], index: 0, kind: input, shape index: {}]   ;;  %s55_s1 = inlined_call_operand.vmem [shape: f32[1,256], index: 1, kind: output, shape index: {}]  }
   0x1   :  { %v5_v0 = vld [vmem:[%s54_s0] sm:$0xf]  ;;  %s12_s0 = smov 3 }
   0x2   :  { %6 = vst [vmem:[#allocation1] sm:$0xf] %v5_v0 }
   0x9   :  { %v13_v1 = vld [vmem:[#allocation1 + $0x1] ss:$2 sm:%s12_s0]   ;;  %v8_v2 = vld [vmem:[#allocation1] ss:$2 sm:%s7_s8]  }
   0xa   :  { %14 = vrot.lane.b32.xlu0 %v13_v1, %s34_s9  ;;  %10 = vst.msk [vmem:[#allocation0] ss:$8 sm:$0x3] %vm9_vm0, %v8_v2  }
  0x7c   :  { %v15_v3 = vpop.permute.xlu0 %14  }
  0x7d   :  { %17 = vst.msk [vmem:[#allocation0] ss:$8 sm:$0x3] %vm16_vm1, %v15_v3  }
  0x84   :  { %v22_v4 = vld [vmem:[#allocation0] sm:$0x1]  ;;  %v27_v5 = vld [vmem:[#allocation0 + $0x8] sm:$0x1] }
  0x85   :  { %25 = vst [vmem:[%s55_s1] sm:$0x1] %v22_v4  ;;  %32 = vst [vmem:[%s55_s1 + $0x1] sm:$0x1] %v27_v5 }

// kernel: student_crowd_counting_forward.1
= control target key start
LH: loop header
LB: loop body
LE: loop exit
PB: predicated region body
PF: predicated region fallthrough
CT: control target
= control target key end

     0   :  { %v1130_v1 = vmov 0   ;;  %vm124_vm0 = vcmask 392192   ;;  %v51_v33 = vlaneseq  ;;  %vm418_vm1 = vcmask 523264   ;;  %s1419_s1 = inlined_call_operand.vmem [shape: bf16[48,320], index: 1, kind: input, shape index: {}]   ;;  %s1420_s0 = inlined_call_operand.vmem [shape: bf16[32,48], index: 0, kind: input, shape index: {}]   ;;  %s1421_s3 = inlined_call_operand.vmem [shape: bf16[320,128], index: 3, kind: input, shape index: {}]   ;;  %s1422_s5 = inlined_call_operand.vmem [shape: bf16[128,256], index: 5, kind: input, shape index: {}]   ;;  %s1423_s2 = inlined_call_operand.vmem [shape: f32[1,320], index: 2, kind: input, shape index: {}]   ;;  %s1424_s7 = inlined_call_operand.vmem [shape: bf16[256,16], index: 7, kind: input, shape index: {}]   ;;  %s1425_s4 = inlined_call_operand.vmem [shape: f32[1,128], index: 4, kind: input, shape index: {}]   ;;  %s1426_s6 = inlined_call_operand.vmem [shape: f32[1,256], index: 6, kind: input, shape index: {}]   ;;  %s1427_s8 = inlined_call_operand.vmem [shape: f32[1,16], index: 8, kind: input, shape index: {}]   ;;  %s1428_s9 = inlined_call_operand.vmem [shape: f32[32,16], index: 9, kind: output, shape index: {}]  }
   0x1   :  { %v1056_v0 = vld [vmem:[%s1419_s1 + $0x34] ss:$12 sps:$4 sm:$0xff]   ;;  %163 = vmatprep.mubr.bf16.mxu0 %v1130_v1  ;;  %v1058_v2 = vld [vmem:[%s1419_s1 + $0x38] ss:$12 sps:$4 sm:$0xff]   ;;  %v1059_v3 = vld [vmem:[%s1419_s1 + $0x30] ss:$12 sps:$4 sm:$0xff]  }
   0x2   :  { %141 = vmatprep.subr.bf16.mxu0 %v1056_v0  ;;  %1033 = vmatprep.subr.bf16.mxu1 %v1058_v2  ;;  %v1060_v4 = vld [vmem:[%s1419_s1 + $0x1c] ss:$12 sps:$4 sm:$0xff]   ;;  %v1062_v5 = vld [vmem:[%s1419_s1 + $0x20] ss:$12 sps:$4 sm:$0xff]   ;;  %v1063_v6 = vld [vmem:[%s1419_s1 + $0x18] ss:$12 sps:$4 sm:$0xff]  }
   0x3   :  { %142 = vmatpush1.bf16.msra.mxu0 %v1059_v3  ;;  %1034 = vmatpush3.bf16.msra.mxu1 %v1058_v2  ;;  %v1064_v7 = vld [vmem:[%s1419_s1 + $0x4] ss:$12 sps:$4 sm:$0xff]   ;;  %v1066_v8 = vld [vmem:[%s1419_s1 + $0x8] ss:$12 sps:$4 sm:$0xff]   ;;  %v1067_v10 = vld [vmem:[%s1419_s1] ss:$12 sps:$4 sm:$0xff]  }
   0x4   :  { %143 = vmatprep.subr.bf16.mxu0 %v1060_v4  ;;  %1035 = vmatprep.subr.bf16.mxu1 %v1062_v5  ;;  %v1068_v9 = vld [vmem:[%s1420_s0] sm:$0xff]   ;;  %v1070_v11 = vld [vmem:[%s1421_s3 + $0x78] sm:$0xff]   ;;  %v1069_v12 = vld [vmem:[%s1420_s0 + $0x8] sm:$0xff]   ;;  %v1283_v34 = vshrl.u32 %v51_v33, 7  ;;  %vm886_vm2 = vcmask 130048  }
   0x5   :  { %1039 = vmatprep.mubr.msk.bf16.mxu1 %vm124_vm0, %v1068_v9  ;;  %v1071_v13 = vld [vmem:[%s1421_s3 + $0x38] sm:$0xff]   ;;  %v1072_v14 = vld [vmem:[%s1421_s3 + $0x70] sm:$0xff]   ;;  %v1074_v16 = vld [vmem:[%s1421_s3 + $0x68] sm:$0xff]  }
   0x6   :  { %v1073_v15 = vld [vmem:[%s1421_s3 + $0x30] sm:$0xff]   ;;  %v1079_v17 = vld [vmem:[%s1421_s3 + $0x98] sm:$0xff]   ;;  %v1075_v18 = vld [vmem:[%s1421_s3 + $0x28] sm:$0xff]   ;;  %v61_v35 = vsub.s32 2, %v1283_v34  ;;  %v57_v36 = vsub.s32 1, %v1283_v34  ;;  %v53_v37 = vsub.s32 0, %v1283_v34 }
   0x7   :  { %144 = vmatpush1.bf16.msra.mxu0 %v1063_v6  ;;  %1036 = vmatpush3.bf16.msra.mxu1 %v1062_v5  ;;  %v1076_v19 = vld [vmem:[%s1421_s3 + $0x60] sm:$0xff]   ;;  %v1078_v21 = vld [vmem:[%s1421_s3 + $0x58] sm:$0xff]   ;;  %v1081_v23 = vld [vmem:[%s1421_s3 + $0x50] sm:$0xff]  }
   0x8   :  { %145 = vmatprep.subr.bf16.mxu0 %v1064_v7  ;;  %1037 = vmatprep.subr.bf16.mxu1 %v1066_v8  ;;  %v1077_v20 = vld [vmem:[%s1421_s3 + $0x20] sm:$0xff]   ;;  %v1080_v22 = vld [vmem:[%s1421_s3 + $0x18] sm:$0xff]   ;;  %v1082_v24 = vld [vmem:[%s1421_s3 + $0x90] sm:$0xff]  }
   0x9   :  { %v1083_v25 = vld [vmem:[%s1421_s3 + $0x10] sm:$0xff]   ;;  %v1084_v26 = vld [vmem:[%s1421_s3 + $0x48] sm:$0xff]   ;;  %v1087_v29 = vld [vmem:[%s1421_s3 + $0x40] sm:$0xff]  }
   0xa   :  { %v1085_v27 = vld [vmem:[%s1421_s3 + $0x88] sm:$0xff]   ;;  %v1088_v30 = vld [vmem:[%s1421_s3 + $0x80] sm:$0xff]   ;;  %v1092_v32 = vld [vmem:[%s1422_s5 + $0x74] ss:$8 sps:$4 sm:$0xff]  }
   0xb   :  { %146 = vmatpush1.bf16.msra.mxu0 %v1067_v10  ;;  %1038 = vmatpush3.bf16.msra.mxu1 %v1066_v8  ;;  %v1086_v28 = vld [vmem:[%s1421_s3 + $0x8] sm:$0xff]   ;;  %v1089_v31 = vld [vmem:[%s1421_s3] sm:$0xff]   ;;  %v1090_v7 = vld [vmem:[%s1422_s5 + $0x70] ss:$8 sps:$4 sm:$0xff]  }
   0xc   :  { %971 = vmatprep.subr.bf16.mxu0 %v1070_v11  ;;  %1043 = vmatprep.subr.bf16.mxu1 %v1079_v17  ;;  %v49_v38 = vld [vmem:[%s1423_s2] sm:$0x7]  ;;  %v1095_v11 = vld [vmem:[%s1422_s5 + $0x64] ss:$8 sps:$4 sm:$0xff]   ;;  %v1108_v33 = vld [vmem:[%s1422_s5 + $0x10] ss:$8 sps:$4 sm:$0xff]  }
   0xd   :  { %v62_v40 = vrot.slane %v49_v38, %v61_v35  ;;  %v58_v42 = vrot.slane %v49_v38, %v57_v36  ;;  %v54_v43 = vrot.slane %v49_v38, %v53_v37  ;;  %v1113_v35 = vld [vmem:[%s1422_s5 + $0x4] ss:$8 sps:$4 sm:$0xff]   ;;  %v1111_v38 = vld [vmem:[%s1422_s5] ss:$8 sps:$4 sm:$0xff]  }
   0xe   :  { %906 = vmatmul.mubr.msk.bf16.vlgmr.msra.gmra.mxu0 %vm124_vm0, %v1068_v9  ;;  %1040 = vmatmul.mubr.msk.bf16.vlgmr.msra.gmra.mxu1 %vm124_vm0, %v1069_v12 }
   0xf   :  { %173 = vmatprep.mubr.bf16.mxu0 %v1130_v1  ;;  %972 = vmatpush3.bf16.msra.mxu0 %v1071_v13 }
  0x10   :  { %973 = vmatprep.subr.bf16.mxu0 %v1072_v14  ;;  %1044 = vmatpush3.bf16.msra.mxu1 %v1079_v17  ;;  %v1093_v17 = vld [vmem:[%s1422_s5 + $0x60] ss:$8 sps:$4 sm:$0xff]  }
  0x11   :  { %1045 = vmatprep.subr.bf16.mxu1 %v1082_v24 }
  0x13   :  { %974 = vmatpush3.bf16.msra.mxu0 %v1073_v15 }
  0x14   :  { %975 = vmatprep.subr.bf16.mxu0 %v1074_v16  ;;  %1046 = vmatpush3.bf16.msra.mxu1 %v1082_v24  ;;  %v1096_v24 = vld [vmem:[%s1422_s5 + $0x50] ss:$8 sps:$4 sm:$0xff]  }
  0x15   :  { %1047 = vmatprep.subr.bf16.mxu1 %v1085_v27 }
  0x16   :  { %907 = vmatmul.mubr.msk.bf16.gmra.mxu0 %vm124_vm0, %v1069_v12 }
  0x17   :  { %976 = vmatpush3.bf16.msra.mxu0 %v1075_v18 }
  0x18   :  { %977 = vmatprep.subr.bf16.mxu0 %v1076_v19  ;;  %1048 = vmatpush3.bf16.msra.mxu1 %v1085_v27  ;;  %v1098_v19 = vld [vmem:[%s1422_s5 + $0x54] ss:$8 sps:$4 sm:$0xff]   ;;  %v1099_v27 = vld [vmem:[%s1422_s5 + $0x40] ss:$8 sps:$4 sm:$0xff]  }
  0x19   :  { %1049 = vmatprep.subr.bf16.mxu1 %v1088_v30 }
  0x1b   :  { %978 = vmatpush3.bf16.msra.mxu0 %v1077_v20 }
  0x1c   :  { %979 = vmatprep.subr.bf16.mxu0 %v1078_v21  ;;  %1050 = vmatpush3.bf16.msra.mxu1 %v1088_v30  ;;  %v1107_v30 = vld [vmem:[%s1422_s5 + $0x24] ss:$8 sps:$4 sm:$0xff]  }
  0x1d   :  { %637 = vmatprep.subr.bf16.mxu1 %v1092_v32  ;;  %v1110_v32 = vld [vmem:[%s1422_s5 + $0x14] ss:$8 sps:$4 sm:$0xff]  }
  0x1f   :  { %980 = vmatpush3.bf16.msra.mxu0 %v1080_v22 }
  0x20   :  { %981 = vmatprep.subr.bf16.mxu0 %v1081_v23 }
  0x23   :  { %982 = vmatpush3.bf16.msra.mxu0 %v1083_v25 }
  0x24   :  { %983 = vmatprep.subr.bf16.mxu0 %v1084_v26  ;;  %v1101_v26 = vld [vmem:[%s1422_s5 + $0x44] ss:$8 sps:$4 sm:$0xff]  }
  0x27   :  { %984 = vmatpush3.bf16.msra.mxu0 %v1086_v28  ;;  %v1102_v28 = vld [vmem:[%s1422_s5 + $0x30] ss:$8 sps:$4 sm:$0xff]  }
  0x28   :  { %985 = vmatprep.subr.bf16.mxu0 %v1087_v29  ;;  %v1104_v29 = vld [vmem:[%s1422_s5 + $0x34] ss:$8 sps:$4 sm:$0xff]  }
  0x2b   :  { %986 = vmatpush3.bf16.msra.mxu0 %v1089_v31  ;;  %v1105_v31 = vld [vmem:[%s1422_s5 + $0x20] ss:$8 sps:$4 sm:$0xff]  }
  0xce   :  { %v165_v39 = vpop.f32.mrf.mxu0  ;;  %v1041_v41 = vpop.f32.mrf.mxu1 }
  0xcf   :  { %v227_v46 = vadd.f32 %v1041_v41, %v62_v40  ;;  %v166_v53 = vadd.f32 %v165_v39, %v54_v43  ;;  %v1114_v39 = vld [vmem:[%s1424_s7 + $0x78] sm:$0xff]   ;;  %v1116_v41 = vld [vmem:[%s1424_s7 + $0x70] sm:$0xff]  }
  0xd0   :  { %v167_v44 = vpop.f32.mrf.mxu0  ;;  %v218_v45 = vpop.f32.mrf.mxu1  ;;  %1005 = vmatprep.subr.bf16.mxu0 %v1114_v39 }
  0xd1   :  { %v168_v49 = vadd.f32 %v167_v44, %v58_v42  ;;  %v219_v50 = vadd.f32 %v218_v45, %v62_v40  ;;  %v241_v58 = vmax.f32 %v227_v46, 0.0  ;;  %v233_v3 = vmax.f32 %v166_v53, 0.0  ;;  %v1119_v44 = vld [vmem:[%s1424_s7 + $0x28] sm:$0xff]   ;;  %v1120_v45 = vld [vmem:[%s1424_s7 + $0x60] sm:$0xff]  }
  0xd2   :  { %v169_v47 = vpop.f32.mrf.mxu0  ;;  %v1042_v48 = vpop.f32.mrf.mxu1  ;;  %v1121_v46 = vld [vmem:[%s1424_s7 + $0x20] sm:$0xff]  }
  0xd3   :  { %v170_v51 = vadd.f32 %v169_v47, %v54_v43  ;;  %v230_v52 = vadd.f32 %v1042_v48, %v62_v40  ;;  %v234_v62 = vmax.f32 %v168_v49, 0.0  ;;  %v235_v63 = vmax.f32 %v219_v50, 0.0  ;;  %v1122_v47 = vld [vmem:[%s1424_s7 + $0x58] sm:$0xff]  }
  0xd4   :  { %v171_v54 = vpop.f32.mrf.mxu0  ;;  %v221_v55 = vpop.f32.mrf.mxu1  ;;  %v1123_v48 = vld [vmem:[%s1424_s7 + $0x18] sm:$0xff]  }
  0xd5   :  { %v172_v56 = vadd.f32 %v171_v54, %v58_v42  ;;  %v222_v57 = vadd.f32 %v221_v55, %v62_v40  ;;  %v236_v59 = vmax.f32 %v170_v51, 0.0  ;;  %v244_v60 = vmax.f32 %v230_v52, 0.0  ;;  %v1115_v40 = vld [vmem:[%s1424_s7 + $0x38] sm:$0xff]   ;;  %v910_v52 = vld [vmem:[%s1425_s4] ss:$0 sm:$0xff] }
  0xd6   :  { %v175_v61 = vpop.f32.mrf.mxu0 }
  0xd7   :  { %v237_v0 = vmax.f32 %v172_v56, 0.0  ;;  %v238_v2 = vmax.f32 %v222_v57, 0.0  ;;  %v245_v8 = vpack.c.bf16 %v236_v59, %v233_v3  ;;  %v250_v9 = vpack.c.bf16 %v244_v60, %v241_v58 }
  0xd8   :  { %v177_v4 = vpop.f32.mrf.mxu0  ;;  %v176_v14 = vadd.f32 %v175_v61, %v54_v43 }
  0xd9   :  { %v246_v5 = vpack.c.bf16 %v237_v0, %v234_v62  ;;  %v247_v6 = vpack.c.bf16 %v238_v2, %v235_v63  ;;  %v178_v12 = vadd.f32 %v177_v4, %v58_v42 }
  0xda   :  { %v179_v10 = vpop.f32.mrf.mxu0  ;;  %v239_v22 = vmax.f32 %v176_v14, 0.0 }
  0xdb   :  { %v180_v13 = vadd.f32 %v179_v10, %v54_v43  ;;  %457 = vmatprep.mubr.bf16.mxu0 %v246_v5  ;;  %1051 = vmatprep.mubr.msk.bf16.mxu1 %vm418_vm1, %v247_v6  ;;  %v240_v20 = vmax.f32 %v178_v12, 0.0  ;;  %v1118_v43 = vld [vmem:[%s1424_s7 + $0x68] sm:$0xff]  }
  0xdc   :  { %v181_v15 = vpop.f32.mrf.mxu0  ;;  %458 = vmatmul.mubr.bf16.vlgmr.msra.gmra.mxu0 %v245_v8  ;;  %1052 = vmatmul.mubr.msk.bf16.vlgmr.msra.gmra.mxu1 %vm418_vm1, %v250_v9 }
  0xdd   :  { %v182_v16 = vadd.f32 %v181_v15, %v58_v42  ;;  %638 = vmatpush1.bf16.msra.mxu1 %v1090_v7  ;;  %669 = vmatprep.mubr.bf16.mxu1 %v1130_v1  ;;  %v242_v18 = vmax.f32 %v180_v13, 0.0  ;;  %v1117_v42 = vld [vmem:[%s1424_s7 + $0x30] sm:$0xff]  }
  0xde   :  { %639 = vmatprep.subr.bf16.mxu1 %v1095_v11  ;;  %1006 = vmatpush3.bf16.msra.mxu0 %v1115_v40 }
  0xdf   :  { %v243_v21 = vmax.f32 %v182_v16, 0.0  ;;  %v248_v25 = vpack.c.bf16 %v242_v18, %v239_v22  ;;  %1007 = vmatprep.subr.bf16.mxu0 %v1116_v41  ;;  %v1125_v18 = vld [vmem:[%s1424_s7 + $0x10] sm:$0xff]   ;;  %v545_v22 = vld [vmem:[%s1426_s6] sm:$0x3] }
  0xe1   :  { %v249_v23 = vpack.c.bf16 %v243_v21, %v240_v20  ;;  %640 = vmatpush1.bf16.msra.mxu1 %v1093_v17  ;;  %v1124_v17 = vld [vmem:[%s1424_s7 + $0x50] sm:$0xff]   ;;  %v1128_v20 = vld [vmem:[%s1424_s7 + $0x40] sm:$0xff]  }
  0xe2   :  { %641 = vmatprep.subr.bf16.mxu1 %v1098_v19  ;;  %1008 = vmatpush3.bf16.msra.mxu0 %v1117_v42  ;;  %v1126_v19 = vld [vmem:[%s1424_s7 + $0x48] sm:$0xff]   ;;  %v1129_v21 = vld [vmem:[%s1424_s7] sm:$0xff]  }
  0xe3   :  { %465 = vmatprep.mubr.bf16.mxu0 %v249_v23  ;;  %1009 = vmatprep.subr.bf16.mxu0 %v1118_v43 }
  0xe4   :  { %466 = vmatmul.mubr.bf16.gmra.mxu0 %v248_v25  ;;  %v550_v25 = vrot.slane %v545_v22, %v53_v37 }
  0xe5   :  { %642 = vmatpush1.bf16.msra.mxu1 %v1096_v24  ;;  %v554_v24 = vrot.slane %v545_v22, %v57_v36 }
  0xe6   :  { %643 = vmatprep.subr.bf16.mxu1 %v1101_v26  ;;  %1010 = vmatpush3.bf16.msra.mxu0 %v1119_v44 }
  0xe7   :  { %1011 = vmatprep.subr.bf16.mxu0 %v1120_v45 }
  0xe9   :  { %644 = vmatpush1.bf16.msra.mxu1 %v1099_v27 }
  0xea   :  { %645 = vmatprep.subr.bf16.mxu1 %v1104_v29  ;;  %1012 = vmatpush3.bf16.msra.mxu0 %v1121_v46 }
  0xeb   :  { %1013 = vmatprep.subr.bf16.mxu0 %v1122_v47 }
  0xed   :  { %646 = vmatpush1.bf16.msra.mxu1 %v1102_v28 }
  0xee   :  { %647 = vmatprep.subr.bf16.mxu1 %v1107_v30  ;;  %1014 = vmatpush3.bf16.msra.mxu0 %v1123_v48 }
  0xef   :  { %1015 = vmatprep.subr.bf16.mxu0 %v1124_v17 }
  0xf1   :  { %648 = vmatpush1.bf16.msra.mxu1 %v1105_v31 }
  0xf2   :  { %649 = vmatprep.subr.bf16.mxu1 %v1110_v32  ;;  %1016 = vmatpush3.bf16.msra.mxu0 %v1125_v18 }
  0xf3   :  { %1017 = vmatprep.subr.bf16.mxu0 %v1126_v19 }
  0xf5   :  { %650 = vmatpush1.bf16.msra.mxu1 %v1108_v33 }
  0xf6   :  { %651 = vmatprep.subr.bf16.mxu1 %v1113_v35 }
  0xf9   :  { %652 = vmatpush1.bf16.msra.mxu1 %v1111_v38 }
 0x19c   :  { %v987_v49 = vpop.f32.mrf.mxu0  ;;  %v1053_v50 = vpop.f32.mrf.mxu1 }
 0x19e   :  { %v988_v51 = vpop.f32.mrf.mxu0  ;;  %v508_v53 = vpop.f32.mrf.mxu1 }
 0x19f   :  { %v989_v54 = vadd.f32 %v988_v51, %v987_v49 }
 0x1a0   :  { %v990_v55 = vpop.f32.mrf.mxu0  ;;  %v1054_v57 = vpop.f32.mrf.mxu1 }
 0x1a1   :  { %v460_v56 = vadd.f32 %v989_v54, %v910_v52  ;;  %v949_v54 = vld [vmem:[%s1427_s8] ss:$0 sm:$0xff] }
 0x1a2   :  { %v991_v58 = vpop.f32.mrf.mxu0  ;;  %v511_v63 = vpop.f32.mrf.mxu1 }
 0x1a3   :  { %v992_v59 = vadd.f32 %v991_v58, %v990_v55  ;;  %v509_v61 = vadd.f32 %v508_v53, %v460_v56 }
 0x1a4   :  { %v993_v60 = vpop.f32.mrf.mxu0 }
 0x1a5   :  { %v463_v62 = vadd.f32 %v992_v59, %v910_v52  ;;  %v523_v5 = vmax.f32 %v509_v61, 0.0 }
 0x1a6   :  { %v994_v0 = vpop.f32.mrf.mxu0 }
 0x1a7   :  { %v512_v2 = vadd.f32 %v511_v63, %v463_v62  ;;  %v995_v3 = vadd.f32 %v994_v0, %v993_v60 }
 0x1a8   :  { %v996_v4 = vpop.f32.mrf.mxu0 }
 0x1a9   :  { %v524_v6 = vmax.f32 %v512_v2, 0.0  ;;  %v468_v7 = vadd.f32 %v995_v3, %v910_v52 }
 0x1aa   :  { %v997_v8 = vpop.f32.mrf.mxu0 }
 0x1ab   :  { %v527_v9 = vpack.c.bf16 %v524_v6, %v523_v5  ;;  %v998_v10 = vadd.f32 %v997_v8, %v996_v4  ;;  %v517_v11 = vadd.f32 %v1053_v50, %v468_v7 }
 0x1ad   :  { %v471_v12 = vadd.f32 %v998_v10, %v910_v52  ;;  %670 = vmatmul.mubr.bf16.vlgmr.msra.gmra.mxu1 %v527_v9  ;;  %v525_v14 = vmax.f32 %v517_v11, 0.0 }
 0x1ae   :  { %679 = vmatprep.mubr.bf16.mxu1 %v1130_v1  ;;  %v1127_v1 = vld [vmem:[%s1424_s7 + $0x8] sm:$0xff]  }
 0x1af   :  { %v520_v13 = vadd.f32 %v1054_v57, %v471_v12  ;;  %1018 = vmatpush3.bf16.msra.mxu0 %v1127_v1 }
 0x1b0   :  { %1019 = vmatprep.subr.bf16.mxu0 %v1128_v20 }
 0x1b1   :  { %v526_v15 = vmax.f32 %v520_v13, 0.0 }
 0x1b3   :  { %v528_v16 = vpack.c.bf16 %v526_v15, %v525_v14  ;;  %1020 = vmatpush3.bf16.msra.mxu0 %v1129_v21 }
 0x1b5   :  { %680 = vmatmul.mubr.bf16.gmra.mxu1 %v528_v16 }
 0x26d   :  { %v671_v23 = vpop.f32.mrf.mxu1 }
 0x26e   :  { %v672_v30 = vadd.f32 %v671_v23, %v550_v25 }
 0x26f   :  { %v673_v26 = vpop.f32.mrf.mxu1 }
 0x270   :  { %v674_v28 = vadd.f32 %v673_v26, %v554_v24  ;;  %v690_v40 = vmax.f32 %v672_v30, 0.0 }
 0x271   :  { %v675_v27 = vpop.f32.mrf.mxu1 }
 0x272   :  { %v676_v29 = vadd.f32 %v675_v27, %v550_v25  ;;  %v691_v38 = vmax.f32 %v674_v28, 0.0 }
 0x273   :  { %v677_v31 = vpop.f32.mrf.mxu1 }
 0x274   :  { %v678_v32 = vadd.f32 %v677_v31, %v554_v24  ;;  %v692_v33 = vmax.f32 %v676_v29, 0.0 }
 0x275   :  { %v681_v35 = vpop.f32.mrf.mxu1 }
 0x276   :  { %v693_v39 = vmax.f32 %v678_v32, 0.0  ;;  %v698_v43 = vpack.c.bf16 %v692_v33, %v690_v40  ;;  %v682_v34 = vadd.f32 %v681_v35, %v550_v25 }
 0x277   :  { %v683_v41 = vpop.f32.mrf.mxu1 }
 0x278   :  { %v699_v42 = vpack.c.bf16 %v693_v39, %v691_v38  ;;  %v684_v36 = vadd.f32 %v683_v41, %v554_v24  ;;  %v694_v50 = vmax.f32 %v682_v34, 0.0 }
 0x279   :  { %v685_v44 = vpop.f32.mrf.mxu1 }
 0x27a   :  { %v686_v45 = vadd.f32 %v685_v44, %v550_v25  ;;  %869 = vmatprep.mubr.bf16.mxu0 %v699_v42  ;;  %v695_v48 = vmax.f32 %v684_v36, 0.0 }
 0x27b   :  { %v687_v37 = vpop.f32.mrf.mxu1  ;;  %870 = vmatmul.mubr.bf16.vlgmr.msra.gmra.mxu0 %v698_v43 }
 0x27c   :  { %v688_v46 = vadd.f32 %v687_v37, %v554_v24  ;;  %v696_v47 = vmax.f32 %v686_v45, 0.0 }
 0x27e   :  { %v697_v49 = vmax.f32 %v688_v46, 0.0  ;;  %v700_v52 = vpack.c.bf16 %v696_v47, %v694_v50 }
 0x280   :  { %v701_v51 = vpack.c.bf16 %v697_v49, %v695_v48 }
 0x282   :  { %877 = vmatprep.mubr.bf16.mxu0 %v701_v51 }
 0x283   :  { %878 = vmatmul.mubr.bf16.gmra.mxu0 %v700_v52 }
 0x33b   :  { %v1021_v53 = vpop.f32.mrf.mxu0 }
 0x33d   :  { %v1022_v55 = vpop.f32.mrf.mxu0 }
 0x33e   :  { %v1023_v56 = vadd.f32 %v1022_v55, %v1021_v53 }
 0x33f   :  { %v1024_v57 = vpop.f32.mrf.mxu0 }
 0x340   :  { %v872_v58 = vadd.f32 %v1023_v56, %v949_v54 }
 0x341   :  { %v1025_v59 = vpop.f32.mrf.mxu0 }
 0x342   :  { %887 = vst.msk [vmem:[%s1428_s9] sm:$0xff] %vm886_vm2, %v872_v58  ;;  %v1026_v60 = vadd.f32 %v1025_v59, %v1024_v57 }
 0x343   :  { %v1027_v61 = vpop.f32.mrf.mxu0 }
 0x344   :  { %v875_v62 = vadd.f32 %v1026_v60, %v949_v54 }
 0x345   :  { %v1028_v63 = vpop.f32.mrf.mxu0 }
 0x346   :  { %888 = vst.msk [vmem:[%s1428_s9 + $0x8] sm:$0xff] %vm886_vm2, %v875_v62  ;;  %v1029_v0 = vadd.f32 %v1028_v63, %v1027_v61 }
 0x347   :  { %v1030_v2 = vpop.f32.mrf.mxu0 }
 0x348   :  { %v880_v3 = vadd.f32 %v1029_v0, %v949_v54 }
 0x349   :  { %v1031_v4 = vpop.f32.mrf.mxu0 }
 0x34a   :  { %889 = vst.msk [vmem:[%s1428_s9 + $0x10] sm:$0xff] %vm886_vm2, %v880_v3  ;;  %v1032_v5 = vadd.f32 %v1031_v4, %v1030_v2 }
 0x34c   :  { %v883_v6 = vadd.f32 %v1032_v5, %v949_v54 }
 0x34e   :  { %890 = vst.msk [vmem:[%s1428_s9 + $0x18] sm:$0xff] %vm886_vm2, %v883_v6 }

</bundles_post_ra>
